<compile_context>
chip_gen: v6e
topology: v6e:2x2x1
jax: 0.10.0
libtpu: 0.0.40
codegen_flags: <defaults>
</compile_context>

<pallas_src>
import jax
import jax.numpy as jnp
from jax.experimental import pallas as pl
from jax.experimental.pallas import tpu as pltpu


# ---------------------------------------------------------------------------
# Pallas kernels
# ---------------------------------------------------------------------------
def _conv_bn_relu_pool_kernel(p_ref, w_ref, b_ref, o_ref):
    """Fused conv(im2col matmul) + folded bias/BN + ReLU + 2x2 maxpool.

    p_ref : (4, tm, K) bf16   patches; leading axis = pool-window position (py, px)
    w_ref : (K, Cout)  bf16   conv weight matrix with BN scale folded in
    b_ref : (1, Cout)  f32    folded conv bias + BN shift
    o_ref : (tm, Cout) bf16   pooled activations, rows ordered (n, ho, wo)
    """
    w = w_ref[...]
    acc = jnp.dot(p_ref[0], w, preferred_element_type=jnp.float32)
    for p in range(1, 4):  # unrolled; maxpool = elementwise max of the 4 window positions
        acc = jnp.maximum(acc, jnp.dot(p_ref[p], w, preferred_element_type=jnp.float32))
    # bias is identical across the 4 positions -> add once after the max; ReLU last
    o_ref[...] = jnp.maximum(acc + b_ref[...], 0.0).astype(o_ref.dtype)


def _classifier_kernel(x_ref, w3_ref, b3_ref, w4_ref, b4_ref, o_ref):
    """Fused Linear -> ReLU -> Linear (both FC layers in one kernel)."""
    h = jnp.dot(x_ref[...], w3_ref[...], preferred_element_type=jnp.float32) + b3_ref[...]
    h = jnp.maximum(h, 0.0).astype(jnp.bfloat16)
    o_ref[...] = (jnp.dot(h, w4_ref[...], preferred_element_type=jnp.float32)
                  + b4_ref[...]).astype(o_ref.dtype)


# ---------------------------------------------------------------------------
# Pallas wrappers
# ---------------------------------------------------------------------------
def _pick_row_tile(m, cap=512):
    """Largest row tile <= cap that divides m (multiple of 8 when tiling)."""
    if m <= cap:
        return m
    for t in range(cap, 7, -8):
        if m % t == 0:
            return t
    return m  # fall back to whole array


def conv_bn_relu_pool(patches, w, b):
    """patches: (4, M, K) bf16, w: (K, C) bf16, b: (1, C) f32 -> (M, C) bf16."""
    P, M, K = patches.shape
    C = w.shape[1]
    tm = _pick_row_tile(M)
    grid = (M // tm,)
    return pl.pallas_call(
        _conv_bn_relu_pool_kernel,
        out_shape=jax.ShapeDtypeStruct((M, C), jnp.bfloat16),
        grid_spec=pltpu.PrefetchScalarGridSpec(
            num_scalar_prefetch=0,
            grid=grid,
            in_specs=[
                pl.BlockSpec((P, tm, K), lambda i: (0, i, 0)),  # full-K block: no K padding
                pl.BlockSpec((K, C), lambda i: (0, 0)),
                pl.BlockSpec((1, C), lambda i: (0, 0)),
            ],
            out_specs=pl.BlockSpec((tm, C), lambda i: (i, 0)),
        ),
        compiler_params=pltpu.CompilerParams(
            dimension_semantics=("parallel",)),
    )(patches, w, b)


def classifier(flat, w3, b3, w4, b4):
    """flat: (N, K) bf16 -> logits (N, out_classes) f32. Whole arrays fit VMEM."""
    N = flat.shape[0]
    out_classes = w4.shape[1]
    return pl.pallas_call(
        _classifier_kernel,
        out_shape=jax.ShapeDtypeStruct((N, out_classes), jnp.float32),
    )(flat, w3, b3, w4, b4)


# ---------------------------------------------------------------------------
# XLA glue (fused under jax.jit): patch extraction in 2x2-pool order
# ---------------------------------------------------------------------------
def _build_pool_ordered_patches(x_nhwc):
    """(N, H, W, C) -> (4, N*(H//2)*(W//2), 9*C); axis 0 = pool-window position (py, px)."""
    N, H, W, C = x_nhwc.shape
    assert H % 2 == 0 and W % 2 == 0, "maxpool 2x2 requires even spatial dims"
    xp = jnp.pad(x_nhwc, ((0, 0), (1, 1), (1, 1), (0, 0)))
    cols = [xp[:, dy:dy + H, dx:dx + W, :] for dy in range(3) for dx in range(3)]
    patches = jnp.concatenate(cols, axis=-1)                 # (N, H, W, 9C), (dy, dx, cin) order
    Ho, Wo = H // 2, W // 2
    patches = patches.reshape(N, Ho, 2, Wo, 2, 9 * C)
    patches = jnp.transpose(patches, (2, 4, 0, 1, 3, 5))     # (py, px, N, Ho, Wo, 9C)
    return patches.reshape(4, N * Ho * Wo, 9 * C)


# ---------------------------------------------------------------------------
# Parameter setup (PyTorch-style params -> kernel-ready matrices)
# ---------------------------------------------------------------------------
def _conv_weight_matrix(w):
    """PyTorch conv weight (Cout, Cin, 3, 3) -> (9*Cin, Cout) matching (dy, dx, cin) patch order."""
    Cout, Cin, _, _ = w.shape
    return jnp.transpose(w, (2, 3, 1, 0)).reshape(9 * Cin, Cout)


def prepare_params(params, feat, eps=1e-5):
    """Fold BN (eval-mode) into conv weights/bias, pre-permute/transpose FC weights, cast bf16."""
    prepped = {}
    for idx in (1, 2):
        wmat = _conv_weight_matrix(params[f"conv{idx}_w"])
        scale = params[f"bn{idx}_gamma"] / jnp.sqrt(params[f"bn{idx}_var"] + eps)
        bias = (params[f"conv{idx}_b"] - params[f"bn{idx}_mean"]) * scale + params[f"bn{idx}_beta"]
        prepped[f"w{idx}"] = (wmat * scale[None, :]).astype(jnp.bfloat16)
        prepped[f"b{idx}"] = bias.reshape(1, -1).astype(jnp.float32)

    hid, kin = params["fc1_w"].shape
    c2 = params["conv2_w"].shape[0]
    # PyTorch Flatten sees (C, H, W); our activations flatten as (H, W, C) -> permute weight rows.
    w3 = params["fc1_w"].reshape(hid, c2, feat, feat).transpose(2, 3, 1, 0).reshape(kin, hid)
    prepped["w3"] = w3.astype(jnp.bfloat16)
    prepped["b3"] = params["fc1_b"].reshape(1, -1).astype(jnp.float32)
    prepped["w4"] = params["fc2_w"].T.astype(jnp.bfloat16)
    prepped["b4"] = params["fc2_b"].reshape(1, -1).astype(jnp.float32)
    return prepped


def init_params(key, input_dim, hidden_layers, size, out_classes):
    h0, h1, h2 = hidden_layers
    feat = size // 4  # two 'same' convs + two 2x2 pools
    ks = jax.random.split(key, 16)

    def u(k, shape, scale=0.1):
        return jax.random.uniform(k, shape, jnp.float32, -scale, scale)

    return {
        "conv1_w": u(ks[0], (h0, input_dim, 3, 3)),
        "conv1_b": u(ks[1], (h0,)),
        "bn1_gamma": 1.0 + u(ks[2], (h0,)),
        "bn1_beta": u(ks[3], (h0,)),
        "bn1_mean": u(ks[4], (h0,)),
        "bn1_var": 1.0 + jnp.abs(u(ks[5], (h0,))),
        "conv2_w": u(ks[6], (h1, h0, 3, 3)),
        "conv2_b": u(ks[7], (h1,)),
        "bn2_gamma": 1.0 + u(ks[8], (h1,)),
        "bn2_beta": u(ks[9], (h1,)),
        "bn2_mean": u(ks[10], (h1,)),
        "bn2_var": 1.0 + jnp.abs(u(ks[11], (h1,))),
        "fc1_w": u(ks[12], (h2, feat * feat * h1)),  # PyTorch layout (out, in)
        "fc1_b": u(ks[13], (h2,)),
        "fc2_w": u(ks[14], (out_classes, h2)),
        "fc2_b": u(ks[15], (out_classes,)),
    }


# ---------------------------------------------------------------------------
# Forward pass (single jit; 3 pallas_calls total)
# ---------------------------------------------------------------------------
@jax.jit
def target_net_forward(prepped, x_nchw):
    x = jnp.transpose(x_nchw, (0, 2, 3, 1)).astype(jnp.bfloat16)   # NCHW -> NHWC, bf16
    N, H, W, _ = x.shape

    p1 = _build_pool_ordered_patches(x)                            # (4, N*H/2*W/2, 9*Cin)
    y1 = conv_bn_relu_pool(p1, prepped["w1"], prepped["b1"])       # (N*H/2*W/2, C1) bf16
    c1 = prepped["w1"].shape[1]
    y1 = y1.reshape(N, H // 2, W // 2, c1)

    p2 = _build_pool_ordered_patches(y1)                           # (4, N*H/4*W/4, 9*C1)
    y2 = conv_bn_relu_pool(p2, prepped["w2"], prepped["b2"])       # (N*H/4*W/4, C2) bf16

    flat = y2.reshape(N, -1)                                       # (H/4, W/4, C2) flatten order
    return classifier(flat, prepped["w3"], prepped["b3"],
                      prepped["w4"], prepped["b4"])                # (N, out_classes) f32


# ---------------------------------------------------------------------------
# Pure-JAX f32 reference (mirrors the PyTorch eval-mode forward) for validation
# ---------------------------------------------------------------------------
def reference_forward(params, x_nchw, eps=1e-5):
    def block(x, w, b, g, beta, mean, var):
        y = jax.lax.conv_general_dilated(
            x, w, window_strides=(1, 1), padding="SAME",
            dimension_numbers=("NCHW", "OIHW", "NCHW"))
        y = y + b[None, :, None, None]
        y = g[None, :, None, None] * (y - mean[None, :, None, None]) / jnp.sqrt(
            var[None, :, None, None] + eps) + beta[None, :, None, None]
        y = jnp.maximum(y, 0.0)
        n, c, h, w_ = y.shape
        return y.reshape(n, c, h // 2, 2, w_ // 2, 2).max(axis=(3, 5))

    y = block(x_nchw, params["conv1_w"], params["conv1_b"],
              params["bn1_gamma"], params["bn1_beta"], params["bn1_mean"], params["bn1_var"])
    y = block(y, params["conv2_w"], params["conv2_b"],
              params["bn2_gamma"], params["bn2_beta"], params["bn2_mean"], params["bn2_var"])
    flat = y.reshape(y.shape[0], -1)                               # PyTorch (C, H, W) order
    h = jnp.maximum(flat @ params["fc1_w"].T + params["fc1_b"], 0.0)
    return h @ params["fc2_w"].T + params["fc2_b"]


if __name__ == "__main__":
    # Small shapes consistent with the module (CIFAR-like but tiny).
    batch = 2
    input_dim = 4
    hidden_layers = [8, 16, 32]
    size = 16
    out_classes = 10
    feat = size // 4

    key = jax.random.PRNGKey(0)
    pkey, xkey = jax.random.split(key)
    params = init_params(pkey, input_dim, hidden_layers, size, out_classes)
    prepped = prepare_params(params, feat)
    x = jax.random.normal(xkey, (batch, input_dim, size, size), jnp.float32)

    logits = jax.block_until_ready(target_net_forward(prepped, x))
    assert logits.shape == (batch, out_classes)

    # Validate against the f32 pure-JAX reference (bf16 matmul operands -> loose tolerance).
    ref = jax.block_until_ready(reference_forward(params, x))
    max_err = float(jnp.max(jnp.abs(logits - ref)))
    assert max_err < 2e-2, f"mismatch vs f32 reference: max abs err {max_err}"

    print("KERNEL_OK")
</pallas_src>

<mosaic_0001>
module attributes {stable_mosaic.version = 11 : i64} {
  func.func @_conv_bn_relu_pool_kernel(%arg0: i32, %arg1: memref<4x128x36xbf16, #tpu.memory_space<vmem>>, %arg2: memref<36x8xbf16, #tpu.memory_space<vmem>>, %arg3: memref<1x8xf32, #tpu.memory_space<vmem>>, %arg4: memref<128x8xbf16, #tpu.memory_space<vmem>>) attributes {dimension_semantics = [#tpu.dimension_semantics<parallel>], iteration_bounds = array<i64: 1>, scalar_prefetch = 0 : i64, scratch_operands = 0 : i64, tpu.core_type = #tpu.core_type<tc>, window_params = [{transform_indices = @transform_0, window_bounds = array<i64: 4, 128, 36>}, {pipeline_mode = #tpu.pipeline_mode<synchronous>, transform_indices = @transform_1, window_bounds = array<i64: 36, 8>}, {pipeline_mode = #tpu.pipeline_mode<synchronous>, transform_indices = @transform_2, window_bounds = array<i64: 1, 8>}, {transform_indices = @transform_3, window_bounds = array<i64: 128, 8>}]} {
    %c0 = arith.constant 0 : index
    %c0_0 = arith.constant 0 : index
    %0 = vector.load %arg2[%c0, %c0_0] : memref<36x8xbf16, #tpu.memory_space<vmem>>, vector<36x8xbf16>
    %c0_1 = arith.constant 0 : index
    %c0_2 = arith.constant 0 : index
    %c0_3 = arith.constant 0 : index
    %1 = vector.load %arg1[%c0_1, %c0_2, %c0_3] : memref<4x128x36xbf16, #tpu.memory_space<vmem>>, vector<1x128x36xbf16>
    %2 = vector.shape_cast %1 : vector<1x128x36xbf16> to vector<128x36xbf16>
    %cst = arith.constant dense<0.000000e+00> : vector<128x8xf32>
    %3 = tpu.matmul %2, %0, %cst {dimension_numbers = #tpu.dot_dimension_numbers<[1], [0], [0], [1], [0, 0, 1, 1], [], []>} : vector<128x36xbf16>, vector<36x8xbf16>, vector<128x8xf32> -> vector<128x8xf32>
    %c1 = arith.constant 1 : index
    %c0_4 = arith.constant 0 : index
    %c0_5 = arith.constant 0 : index
    %4 = vector.load %arg1[%c1, %c0_4, %c0_5] : memref<4x128x36xbf16, #tpu.memory_space<vmem>>, vector<1x128x36xbf16>
    %5 = vector.shape_cast %4 : vector<1x128x36xbf16> to vector<128x36xbf16>
    %cst_6 = arith.constant dense<0.000000e+00> : vector<128x8xf32>
    %6 = tpu.matmul %5, %0, %cst_6 {dimension_numbers = #tpu.dot_dimension_numbers<[1], [0], [0], [1], [0, 0, 1, 1], [], []>} : vector<128x36xbf16>, vector<36x8xbf16>, vector<128x8xf32> -> vector<128x8xf32>
    %7 = arith.maximumf %3, %6 : vector<128x8xf32>
    %c2 = arith.constant 2 : index
    %c0_7 = arith.constant 0 : index
    %c0_8 = arith.constant 0 : index
    %8 = vector.load %arg1[%c2, %c0_7, %c0_8] : memref<4x128x36xbf16, #tpu.memory_space<vmem>>, vector<1x128x36xbf16>
    %9 = vector.shape_cast %8 : vector<1x128x36xbf16> to vector<128x36xbf16>
    %cst_9 = arith.constant dense<0.000000e+00> : vector<128x8xf32>
    %10 = tpu.matmul %9, %0, %cst_9 {dimension_numbers = #tpu.dot_dimension_numbers<[1], [0], [0], [1], [0, 0, 1, 1], [], []>} : vector<128x36xbf16>, vector<36x8xbf16>, vector<128x8xf32> -> vector<128x8xf32>
    %11 = arith.maximumf %7, %10 : vector<128x8xf32>
    %c3 = arith.constant 3 : index
    %c0_10 = arith.constant 0 : index
    %c0_11 = arith.constant 0 : index
    %12 = vector.load %arg1[%c3, %c0_10, %c0_11] : memref<4x128x36xbf16, #tpu.memory_space<vmem>>, vector<1x128x36xbf16>
    %13 = vector.shape_cast %12 : vector<1x128x36xbf16> to vector<128x36xbf16>
    %cst_12 = arith.constant dense<0.000000e+00> : vector<128x8xf32>
    %14 = tpu.matmul %13, %0, %cst_12 {dimension_numbers = #tpu.dot_dimension_numbers<[1], [0], [0], [1], [0, 0, 1, 1], [], []>} : vector<128x36xbf16>, vector<36x8xbf16>, vector<128x8xf32> -> vector<128x8xf32>
    %15 = arith.maximumf %11, %14 : vector<128x8xf32>
    %c0_13 = arith.constant 0 : index
    %c0_14 = arith.constant 0 : index
    %16 = vector.load %arg3[%c0_13, %c0_14] : memref<1x8xf32, #tpu.memory_space<vmem>>, vector<1x8xf32>
    %17 = vector.broadcast %16 : vector<1x8xf32> to vector<128x8xf32>
    %18 = arith.addf %15, %17 : vector<128x8xf32>
    %cst_15 = arith.constant 0.000000e+00 : f32
    %19 = vector.broadcast %cst_15 : f32 to vector<128x8xf32>
    %20 = arith.maximumf %18, %19 : vector<128x8xf32>
    %21 = arith.truncf %20 : vector<128x8xf32> to vector<128x8xbf16>
    %c0_16 = arith.constant 0 : index
    %c0_17 = arith.constant 0 : index
    %22 = vector.load %arg4[%c0_16, %c0_17] : memref<128x8xbf16, #tpu.memory_space<vmem>>, vector<128x8xbf16>
    tpu.vector_store %arg4[%c0_16, %c0_17], %21 {strides = array<i32>} : memref<128x8xbf16, #tpu.memory_space<vmem>>, vector<128x8xbf16>,
    return
  }
  func.func @transform_0(%arg0: i32) -> (i32, i32, i32) {
    %c0_i32 = arith.constant 0 : i32
    %c0_i32_0 = arith.constant 0 : i32
    %c0_i32_1 = arith.constant 0 : i32
    return %c0_i32, %arg0, %c0_i32_0 : i32, i32, i32
  }
  func.func @transform_1(%arg0: i32) -> (i32, i32) {
    %c0_i32 = arith.constant 0 : i32
    %c0_i32_0 = arith.constant 0 : i32
    %c0_i32_1 = arith.constant 0 : i32
    return %c0_i32, %c0_i32_0 : i32, i32
  }
  func.func @transform_2(%arg0: i32) -> (i32, i32) {
    %c0_i32 = arith.constant 0 : i32
    %c0_i32_0 = arith.constant 0 : i32
    %c0_i32_1 = arith.constant 0 : i32
    return %c0_i32, %c0_i32_0 : i32, i32
  }
  func.func @transform_3(%arg0: i32) -> (i32, i32) {
    %c0_i32 = arith.constant 0 : i32
    %c0_i32_0 = arith.constant 0 : i32
    return %arg0, %c0_i32 : i32, i32
  }
}

module attributes {stable_mosaic.version = 11 : i64} {
  func.func @_conv_bn_relu_pool_kernel(%arg0: i32, %arg1: memref<4x32x72xbf16, #tpu.memory_space<vmem>>, %arg2: memref<72x16xbf16, #tpu.memory_space<vmem>>, %arg3: memref<1x16xf32, #tpu.memory_space<vmem>>, %arg4: memref<32x16xbf16, #tpu.memory_space<vmem>>) attributes {dimension_semantics = [#tpu.dimension_semantics<parallel>], iteration_bounds = array<i64: 1>, scalar_prefetch = 0 : i64, scratch_operands = 0 : i64, tpu.core_type = #tpu.core_type<tc>, window_params = [{transform_indices = @transform_0, window_bounds = array<i64: 4, 32, 72>}, {pipeline_mode = #tpu.pipeline_mode<synchronous>, transform_indices = @transform_1, window_bounds = array<i64: 72, 16>}, {pipeline_mode = #tpu.pipeline_mode<synchronous>, transform_indices = @transform_2, window_bounds = array<i64: 1, 16>}, {transform_indices = @transform_3, window_bounds = array<i64: 32, 16>}]} {
    %c0 = arith.constant 0 : index
    %c0_0 = arith.constant 0 : index
    %0 = vector.load %arg2[%c0, %c0_0] : memref<72x16xbf16, #tpu.memory_space<vmem>>, vector<72x16xbf16>
    %c0_1 = arith.constant 0 : index
    %c0_2 = arith.constant 0 : index
    %c0_3 = arith.constant 0 : index
    %1 = vector.load %arg1[%c0_1, %c0_2, %c0_3] : memref<4x32x72xbf16, #tpu.memory_space<vmem>>, vector<1x32x72xbf16>
    %2 = vector.shape_cast %1 : vector<1x32x72xbf16> to vector<32x72xbf16>
    %cst = arith.constant dense<0.000000e+00> : vector<32x16xf32>
    %3 = tpu.matmul %2, %0, %cst {dimension_numbers = #tpu.dot_dimension_numbers<[1], [0], [0], [1], [0, 0, 1, 1], [], []>} : vector<32x72xbf16>, vector<72x16xbf16>, vector<32x16xf32> -> vector<32x16xf32>
    %c1 = arith.constant 1 : index
    %c0_4 = arith.constant 0 : index
    %c0_5 = arith.constant 0 : index
    %4 = vector.load %arg1[%c1, %c0_4, %c0_5] : memref<4x32x72xbf16, #tpu.memory_space<vmem>>, vector<1x32x72xbf16>
    %5 = vector.shape_cast %4 : vector<1x32x72xbf16> to vector<32x72xbf16>
    %cst_6 = arith.constant dense<0.000000e+00> : vector<32x16xf32>
    %6 = tpu.matmul %5, %0, %cst_6 {dimension_numbers = #tpu.dot_dimension_numbers<[1], [0], [0], [1], [0, 0, 1, 1], [], []>} : vector<32x72xbf16>, vector<72x16xbf16>, vector<32x16xf32> -> vector<32x16xf32>
    %7 = arith.maximumf %3, %6 : vector<32x16xf32>
    %c2 = arith.constant 2 : index
    %c0_7 = arith.constant 0 : index
    %c0_8 = arith.constant 0 : index
    %8 = vector.load %arg1[%c2, %c0_7, %c0_8] : memref<4x32x72xbf16, #tpu.memory_space<vmem>>, vector<1x32x72xbf16>
    %9 = vector.shape_cast %8 : vector<1x32x72xbf16> to vector<32x72xbf16>
    %cst_9 = arith.constant dense<0.000000e+00> : vector<32x16xf32>
    %10 = tpu.matmul %9, %0, %cst_9 {dimension_numbers = #tpu.dot_dimension_numbers<[1], [0], [0], [1], [0, 0, 1, 1], [], []>} : vector<32x72xbf16>, vector<72x16xbf16>, vector<32x16xf32> -> vector<32x16xf32>
    %11 = arith.maximumf %7, %10 : vector<32x16xf32>
    %c3 = arith.constant 3 : index
    %c0_10 = arith.constant 0 : index
    %c0_11 = arith.constant 0 : index
    %12 = vector.load %arg1[%c3, %c0_10, %c0_11] : memref<4x32x72xbf16, #tpu.memory_space<vmem>>, vector<1x32x72xbf16>
    %13 = vector.shape_cast %12 : vector<1x32x72xbf16> to vector<32x72xbf16>
    %cst_12 = arith.constant dense<0.000000e+00> : vector<32x16xf32>
    %14 = tpu.matmul %13, %0, %cst_12 {dimension_numbers = #tpu.dot_dimension_numbers<[1], [0], [0], [1], [0, 0, 1, 1], [], []>} : vector<32x72xbf16>, vector<72x16xbf16>, vector<32x16xf32> -> vector<32x16xf32>
    %15 = arith.maximumf %11, %14 : vector<32x16xf32>
    %c0_13 = arith.constant 0 : index
    %c0_14 = arith.constant 0 : index
    %16 = vector.load %arg3[%c0_13, %c0_14] : memref<1x16xf32, #tpu.memory_space<vmem>>, vector<1x16xf32>
    %17 = vector.broadcast %16 : vector<1x16xf32> to vector<32x16xf32>
    %18 = arith.addf %15, %17 : vector<32x16xf32>
    %cst_15 = arith.constant 0.000000e+00 : f32
    %19 = vector.broadcast %cst_15 : f32 to vector<32x16xf32>
    %20 = arith.maximumf %18, %19 : vector<32x16xf32>
    %21 = arith.truncf %20 : vector<32x16xf32> to vector<32x16xbf16>
    %c0_16 = arith.constant 0 : index
    %c0_17 = arith.constant 0 : index
    %22 = vector.load %arg4[%c0_16, %c0_17] : memref<32x16xbf16, #tpu.memory_space<vmem>>, vector<32x16xbf16>
    tpu.vector_store %arg4[%c0_16, %c0_17], %21 {strides = array<i32>} : memref<32x16xbf16, #tpu.memory_space<vmem>>, vector<32x16xbf16>,
    return
  }
  func.func @transform_0(%arg0: i32) -> (i32, i32, i32) {
    %c0_i32 = arith.constant 0 : i32
    %c0_i32_0 = arith.constant 0 : i32
    %c0_i32_1 = arith.constant 0 : i32
    return %c0_i32, %arg0, %c0_i32_0 : i32, i32, i32
  }
  func.func @transform_1(%arg0: i32) -> (i32, i32) {
    %c0_i32 = arith.constant 0 : i32
    %c0_i32_0 = arith.constant 0 : i32
    %c0_i32_1 = arith.constant 0 : i32
    return %c0_i32, %c0_i32_0 : i32, i32
  }
  func.func @transform_2(%arg0: i32) -> (i32, i32) {
    %c0_i32 = arith.constant 0 : i32
    %c0_i32_0 = arith.constant 0 : i32
    %c0_i32_1 = arith.constant 0 : i32
    return %c0_i32, %c0_i32_0 : i32, i32
  }
  func.func @transform_3(%arg0: i32) -> (i32, i32) {
    %c0_i32 = arith.constant 0 : i32
    %c0_i32_0 = arith.constant 0 : i32
    return %arg0, %c0_i32 : i32, i32
  }
}

module attributes {stable_mosaic.version = 11 : i64} {
  func.func @_classifier_kernel(%arg0: memref<2x256xbf16, #tpu.memory_space<vmem>>, %arg1: memref<256x32xbf16, #tpu.memory_space<vmem>>, %arg2: memref<1x32xf32, #tpu.memory_space<vmem>>, %arg3: memref<32x10xbf16, #tpu.memory_space<vmem>>, %arg4: memref<1x10xf32, #tpu.memory_space<vmem>>, %arg5: memref<2x10xf32, #tpu.memory_space<vmem>>) attributes {dimension_semantics = [], scalar_prefetch = 0 : i64, scratch_operands = 0 : i64, tpu.core_type = #tpu.core_type<tc>} {
    %c0 = arith.constant 0 : index
    %c0_0 = arith.constant 0 : index
    %0 = vector.load %arg0[%c0, %c0_0] : memref<2x256xbf16, #tpu.memory_space<vmem>>, vector<2x256xbf16>
    %c0_1 = arith.constant 0 : index
    %c0_2 = arith.constant 0 : index
    %1 = vector.load %arg1[%c0_1, %c0_2] : memref<256x32xbf16, #tpu.memory_space<vmem>>, vector<256x32xbf16>
    %cst = arith.constant dense<0.000000e+00> : vector<2x32xf32>
    %2 = tpu.matmul %0, %1, %cst {dimension_numbers = #tpu.dot_dimension_numbers<[1], [0], [0], [1], [0, 0, 1, 1], [], []>} : vector<2x256xbf16>, vector<256x32xbf16>, vector<2x32xf32> -> vector<2x32xf32>
    %c0_3 = arith.constant 0 : index
    %c0_4 = arith.constant 0 : index
    %3 = vector.load %arg2[%c0_3, %c0_4] : memref<1x32xf32, #tpu.memory_space<vmem>>, vector<1x32xf32>
    %4 = vector.broadcast %3 : vector<1x32xf32> to vector<2x32xf32>
    %5 = arith.addf %2, %4 : vector<2x32xf32>
    %cst_5 = arith.constant 0.000000e+00 : f32
    %6 = vector.broadcast %cst_5 : f32 to vector<2x32xf32>
    %7 = arith.maximumf %5, %6 : vector<2x32xf32>
    %8 = arith.truncf %7 : vector<2x32xf32> to vector<2x32xbf16>
    %c0_6 = arith.constant 0 : index
    %c0_7 = arith.constant 0 : index
    %9 = vector.load %arg3[%c0_6, %c0_7] : memref<32x10xbf16, #tpu.memory_space<vmem>>, vector<32x10xbf16>
    %cst_8 = arith.constant dense<0.000000e+00> : vector<2x10xf32>
    %10 = tpu.matmul %8, %9, %cst_8 {dimension_numbers = #tpu.dot_dimension_numbers<[1], [0], [0], [1], [0, 0, 1, 1], [], []>} : vector<2x32xbf16>, vector<32x10xbf16>, vector<2x10xf32> -> vector<2x10xf32>
    %c0_9 = arith.constant 0 : index
    %c0_10 = arith.constant 0 : index
    %11 = vector.load %arg4[%c0_9, %c0_10] : memref<1x10xf32, #tpu.memory_space<vmem>>, vector<1x10xf32>
    %12 = vector.broadcast %11 : vector<1x10xf32> to vector<2x10xf32>
    %13 = arith.addf %10, %12 : vector<2x10xf32>
    %c0_11 = arith.constant 0 : index
    %c0_12 = arith.constant 0 : index
    %14 = vector.load %arg5[%c0_11, %c0_12] : memref<2x10xf32, #tpu.memory_space<vmem>>, vector<2x10xf32>
    tpu.vector_store %arg5[%c0_11, %c0_12], %13 {strides = array<i32>} : memref<2x10xf32, #tpu.memory_space<vmem>>, vector<2x10xf32>,
    return
  }
}

</mosaic_0001>

<bundles_post_ra>
// kernel: target_net_forward.3
= control target key start
LH: loop header
LB: loop body
LE: loop exit
PB: predicated region body
PF: predicated region fallthrough
CT: control target
= control target key end

     0   :  { %vm116_vm0 = vcmask 1041408   ;;  %vm91_vm1 = vcmask 293888   ;;  %vm902_vm2 = vcmask 60416   ;;  %s1555_s1 = inlined_call_operand.vmem [shape: bf16[36,8], index: 1, kind: input, shape index: {}]   ;;  %s1556_s0 = inlined_call_operand.vmem [shape: bf16[4,128,36], index: 0, kind: input, shape index: {}]   ;;  %s1557_s2 = inlined_call_operand.vmem [shape: f32[1,8], index: 2, kind: input, shape index: {}]   ;;  %s1558_s3 = inlined_call_operand.vmem [shape: bf16[128,8], index: 3, kind: output, shape index: {}]  }
   0x1   :  { %v1208_v0 = vld [vmem:[%s1555_s1 + $0x8] sm:$0xff]   ;;  %v1209_v1 = vld [vmem:[%s1555_s1 + $0x10] ss:$0 sps:$4 sm:$0x33]   ;;  %v1210_v2 = vld [vmem:[%s1556_s0] sm:$0xff]  }
   0x2   :  { %1203 = vmatprep.subr.msk.bf16.mxu0 %vm116_vm0, %v1209_v1  ;;  %1204 = vmatprep.subr.msk.bf16.mxu1 %vm116_vm0, %v1209_v1  ;;  %v118_v3 = vsel %vm116_vm0, %v1209_v1, 0  ;;  %v1211_v4 = vld [vmem:[%s1556_s0 + $0x40] sm:$0xff]   ;;  %v1212_v6 = vld [vmem:[%s1556_s0 + $0x8] sm:$0xff]   ;;  %v1214_v8 = vld [vmem:[%s1556_s0 + $0x10] sm:$0xff]  }
   0x3   :  { %1116 = vmatpush3.bf16.msra.mxu0 %v118_v3  ;;  %1138 = vmatpush3.bf16.msra.mxu1 %v118_v3  ;;  %v1207_v5 = vld [vmem:[%s1555_s1] sm:$0xff]   ;;  %v1213_v7 = vld [vmem:[%s1556_s0 + $0x48] sm:$0xff]   ;;  %v1215_v9 = vld [vmem:[%s1556_s0 + $0x50] sm:$0xff]  }
   0x4   :  { %1117 = vmatprep.subr.bf16.mxu0 %v1208_v0  ;;  %1139 = vmatprep.subr.bf16.mxu1 %v1208_v0  ;;  %v1216_v10 = vld [vmem:[%s1556_s0 + $0x18] sm:$0xff]   ;;  %v1218_v12 = vld [vmem:[%s1556_s0 + $0x20] sm:$0xff]   ;;  %v1220_v14 = vld [vmem:[%s1556_s0 + $0x28] sm:$0xff]  }
   0x5   :  { %1121 = vmatprep.mubr.msk.bf16.mxu0 %vm91_vm1, %v1210_v2  ;;  %1143 = vmatprep.mubr.msk.bf16.mxu1 %vm91_vm1, %v1211_v4  ;;  %v1217_v11 = vld [vmem:[%s1556_s0 + $0x58] sm:$0xff]   ;;  %v1219_v13 = vld [vmem:[%s1556_s0 + $0x60] sm:$0xff]   ;;  %v1221_v15 = vld [vmem:[%s1556_s0 + $0x68] sm:$0xff]  }
   0x6   :  { %v1222_v16 = vld [vmem:[%s1556_s0 + $0x30] sm:$0xff]   ;;  %v1224_v18 = vld [vmem:[%s1556_s0 + $0x38] sm:$0xff]   ;;  %v1226_v20 = vld [vmem:[%s1556_s0 + $0x80] sm:$0xff]  }
   0x7   :  { %1118 = vmatpush3.bf16.msra.mxu0 %v1208_v0  ;;  %1140 = vmatpush3.bf16.msra.mxu1 %v1208_v0  ;;  %v1223_v17 = vld [vmem:[%s1556_s0 + $0x70] sm:$0xff]   ;;  %v1225_v19 = vld [vmem:[%s1556_s0 + $0x78] sm:$0xff]   ;;  %v1227_v21 = vld [vmem:[%s1556_s0 + $0xc0] sm:$0xff]  }
   0x8   :  { %1119 = vmatprep.subr.bf16.mxu0 %v1207_v5  ;;  %1141 = vmatprep.subr.bf16.mxu1 %v1207_v5  ;;  %v1228_v22 = vld [vmem:[%s1556_s0 + $0x88] sm:$0xff]   ;;  %v1230_v24 = vld [vmem:[%s1556_s0 + $0x90] sm:$0xff]   ;;  %v1232_v26 = vld [vmem:[%s1556_s0 + $0x98] sm:$0xff]  }
   0x9   :  { %v1229_v23 = vld [vmem:[%s1556_s0 + $0xc8] sm:$0xff]   ;;  %v1231_v25 = vld [vmem:[%s1556_s0 + $0xd0] sm:$0xff]   ;;  %v1233_v27 = vld [vmem:[%s1556_s0 + $0xd8] sm:$0xff]  }
   0xa   :  { %v1234_v28 = vld [vmem:[%s1556_s0 + $0xa0] sm:$0xff]   ;;  %v1236_v30 = vld [vmem:[%s1556_s0 + $0xa8] sm:$0xff]   ;;  %v1238_v32 = vld [vmem:[%s1556_s0 + $0xb0] sm:$0xff]  }
   0xb   :  { %1120 = vmatpush3.bf16.msra.mxu0 %v1207_v5  ;;  %1142 = vmatpush3.bf16.msra.mxu1 %v1207_v5  ;;  %v1235_v29 = vld [vmem:[%s1556_s0 + $0xe0] sm:$0xff]   ;;  %v1237_v31 = vld [vmem:[%s1556_s0 + $0xe8] sm:$0xff]   ;;  %v1239_v33 = vld [vmem:[%s1556_s0 + $0xf0] sm:$0xff]  }
   0xc   :  { %1205 = vmatprep.subr.msk.bf16.mxu0 %vm116_vm0, %v1209_v1  ;;  %1206 = vmatprep.subr.msk.bf16.mxu1 %vm116_vm0, %v1209_v1  ;;  %v1240_v34 = vld [vmem:[%s1556_s0 + $0xb8] sm:$0xff]  }
   0xd   :  { %v1241_v35 = vld [vmem:[%s1556_s0 + $0xf8] sm:$0xff]  }
   0xe   :  { %1122 = vmatmul.mubr.msk.bf16.vlgmr.msra.gmra.mxu0 %vm91_vm1, %v1212_v6  ;;  %1144 = vmatmul.mubr.msk.bf16.vlgmr.msra.gmra.mxu1 %vm91_vm1, %v1213_v7 }
   0xf   :  { %1160 = vmatpush3.bf16.msra.mxu0 %v118_v3  ;;  %1182 = vmatpush3.bf16.msra.mxu1 %v118_v3 }
  0x10   :  { %1125 = vmatprep.mubr.msk.bf16.mxu0 %vm91_vm1, %v1214_v8  ;;  %1147 = vmatprep.mubr.msk.bf16.mxu1 %vm91_vm1, %v1215_v9  ;;  %v1451_v9 = vld [vmem:[%s1557_s2] ss:$0 sm:$0xff] }
  0x11   :  { %1161 = vmatprep.subr.bf16.mxu0 %v1208_v0  ;;  %1183 = vmatprep.subr.bf16.mxu1 %v1208_v0 }
  0x13   :  { %1162 = vmatpush3.bf16.msra.mxu0 %v1208_v0  ;;  %1184 = vmatpush3.bf16.msra.mxu1 %v1208_v0 }
  0x14   :  { %1163 = vmatprep.subr.bf16.mxu0 %v1207_v5  ;;  %1185 = vmatprep.subr.bf16.mxu1 %v1207_v5 }
  0x16   :  { %1126 = vmatmul.mubr.msk.bf16.gmra.mxu0 %vm91_vm1, %v1216_v10  ;;  %1148 = vmatmul.mubr.msk.bf16.gmra.mxu1 %vm91_vm1, %v1217_v11 }
  0x17   :  { %1129 = vmatprep.mubr.msk.bf16.mxu0 %vm91_vm1, %v1218_v12  ;;  %1151 = vmatprep.mubr.msk.bf16.mxu1 %vm91_vm1, %v1219_v13 }
  0x18   :  { %1164 = vmatpush3.bf16.msra.mxu0 %v1207_v5  ;;  %1186 = vmatpush3.bf16.msra.mxu1 %v1207_v5 }
  0x1e   :  { %1130 = vmatmul.mubr.msk.bf16.gmra.mxu0 %vm91_vm1, %v1220_v14  ;;  %1152 = vmatmul.mubr.msk.bf16.gmra.mxu1 %vm91_vm1, %v1221_v15 }
  0x1f   :  { %1133 = vmatprep.mubr.msk.bf16.mxu0 %vm91_vm1, %v1222_v16  ;;  %1155 = vmatprep.mubr.msk.bf16.mxu1 %vm91_vm1, %v1223_v17 }
  0x26   :  { %1134 = vmatmul.mubr.msk.bf16.gmra.mxu0 %vm91_vm1, %v1224_v18  ;;  %1156 = vmatmul.mubr.msk.bf16.gmra.mxu1 %vm91_vm1, %v1225_v19 }
  0x27   :  { %1165 = vmatprep.mubr.msk.bf16.mxu0 %vm91_vm1, %v1226_v20  ;;  %1187 = vmatprep.mubr.msk.bf16.mxu1 %vm91_vm1, %v1227_v21 }
  0x2e   :  { %1166 = vmatmul.mubr.msk.bf16.vlgmr.msra.gmra.mxu0 %vm91_vm1, %v1228_v22  ;;  %1188 = vmatmul.mubr.msk.bf16.vlgmr.msra.gmra.mxu1 %vm91_vm1, %v1229_v23 }
  0x2f   :  { %1169 = vmatprep.mubr.msk.bf16.mxu0 %vm91_vm1, %v1230_v24  ;;  %1191 = vmatprep.mubr.msk.bf16.mxu1 %vm91_vm1, %v1231_v25 }
  0x36   :  { %1170 = vmatmul.mubr.msk.bf16.gmra.mxu0 %vm91_vm1, %v1232_v26  ;;  %1192 = vmatmul.mubr.msk.bf16.gmra.mxu1 %vm91_vm1, %v1233_v27 }
  0x37   :  { %1173 = vmatprep.mubr.msk.bf16.mxu0 %vm91_vm1, %v1234_v28  ;;  %1195 = vmatprep.mubr.msk.bf16.mxu1 %vm91_vm1, %v1235_v29 }
  0x3e   :  { %1174 = vmatmul.mubr.msk.bf16.gmra.mxu0 %vm91_vm1, %v1236_v30  ;;  %1196 = vmatmul.mubr.msk.bf16.gmra.mxu1 %vm91_vm1, %v1237_v31 }
  0x3f   :  { %1177 = vmatprep.mubr.msk.bf16.mxu0 %vm91_vm1, %v1238_v32  ;;  %1199 = vmatprep.mubr.msk.bf16.mxu1 %vm91_vm1, %v1239_v33 }
  0x46   :  { %1178 = vmatmul.mubr.msk.bf16.gmra.mxu0 %vm91_vm1, %v1240_v34  ;;  %1200 = vmatmul.mubr.msk.bf16.gmra.mxu1 %vm91_vm1, %v1241_v35 }
  0xce   :  { %v1123_v36 = vpop.f32.mrf.mxu0  ;;  %v1145_v37 = vpop.f32.mrf.mxu1 }
  0xcf   :  { %v397_v4 = vmax.f32 %v1123_v36, %v1145_v37 }
  0xd0   :  { %v154_v38 = vpop.f32.mrf.mxu0  ;;  %v332_v39 = vpop.f32.mrf.mxu1 }
  0xd1   :  { %v395_v7 = vmax.f32 %v154_v38, %v332_v39 }
  0xd2   :  { %v1124_v40 = vpop.f32.mrf.mxu0  ;;  %v1146_v41 = vpop.f32.mrf.mxu1 }
  0xd3   :  { %v398_v12 = vmax.f32 %v1124_v40, %v1146_v41 }
  0xd4   :  { %v157_v42 = vpop.f32.mrf.mxu0  ;;  %v335_v43 = vpop.f32.mrf.mxu1 }
  0xd5   :  { %v396_v17 = vmax.f32 %v157_v42, %v335_v43 }
  0xd6   :  { %v1127_v44 = vpop.f32.mrf.mxu0  ;;  %v1149_v45 = vpop.f32.mrf.mxu1 }
  0xd7   :  { %v401_v27 = vmax.f32 %v1127_v44, %v1149_v45 }
  0xd8   :  { %v1404_v46 = vpop.f32.mrf.mxu0  ;;  %v1406_v47 = vpop.f32.mrf.mxu1 }
  0xd9   :  { %v399_v28 = vmax.f32 %v1404_v46, %v1406_v47 }
  0xda   :  { %v1408_v48 = vpop.f32.mrf.mxu0  ;;  %v1410_v49 = vpop.f32.mrf.mxu1 }
  0xdb   :  { %v402_v35 = vmax.f32 %v1408_v48, %v1410_v49 }
  0xdc   :  { %v1412_v50 = vpop.f32.mrf.mxu0  ;;  %v1414_v51 = vpop.f32.mrf.mxu1 }
  0xdd   :  { %v400_v43 = vmax.f32 %v1412_v50, %v1414_v51 }
  0xde   :  { %v1416_v52 = vpop.f32.mrf.mxu0  ;;  %v1418_v53 = vpop.f32.mrf.mxu1 }
  0xe0   :  { %v1420_v54 = vpop.f32.mrf.mxu0  ;;  %v1422_v55 = vpop.f32.mrf.mxu1 }
  0xe2   :  { %v1424_v56 = vpop.f32.mrf.mxu0  ;;  %v1426_v57 = vpop.f32.mrf.mxu1 }
  0xe4   :  { %v1428_v58 = vpop.f32.mrf.mxu0  ;;  %v1430_v59 = vpop.f32.mrf.mxu1 }
  0xe6   :  { %v1432_v60 = vpop.f32.mrf.mxu0  ;;  %v1434_v61 = vpop.f32.mrf.mxu1 }
  0xe8   :  { %v1436_v62 = vpop.f32.mrf.mxu0  ;;  %v1438_v63 = vpop.f32.mrf.mxu1 }
  0xea   :  { %v1440_v0 = vpop.f32.mrf.mxu0  ;;  %v1442_v1 = vpop.f32.mrf.mxu1 }
  0xec   :  { %v1444_v2 = vpop.f32.mrf.mxu0  ;;  %v1446_v3 = vpop.f32.mrf.mxu1 }
  0xee   :  { %v1167_v5 = vpop.f32.mrf.mxu0  ;;  %v1189_v6 = vpop.f32.mrf.mxu1 }
  0xef   :  { %v591_v8 = vmax.f32 %v397_v4, %v1167_v5  ;;  %v405_v5 = vmax.f32 %v1416_v52, %v1418_v53 }
  0xf0   :  { %v526_v10 = vpop.f32.mrf.mxu0  ;;  %v720_v11 = vpop.f32.mrf.mxu1 }
  0xf1   :  { %v785_v13 = vmax.f32 %v591_v8, %v1189_v6  ;;  %v589_v14 = vmax.f32 %v395_v7, %v526_v10 }
  0xf2   :  { %v1168_v15 = vpop.f32.mrf.mxu0  ;;  %v1190_v16 = vpop.f32.mrf.mxu1 }
  0xf3   :  { %v808_v18 = vadd.f32 %v1451_v9, %v785_v13  ;;  %v783_v19 = vmax.f32 %v589_v14, %v720_v11  ;;  %v592_v20 = vmax.f32 %v398_v12, %v1168_v15 }
  0xf4   :  { %v529_v21 = vpop.f32.mrf.mxu0  ;;  %v723_v22 = vpop.f32.mrf.mxu1 }
  0xf5   :  { %v824_v23 = vmax.f32 %v808_v18, 0.0  ;;  %v806_v24 = vadd.f32 %v1451_v9, %v783_v19  ;;  %v786_v25 = vmax.f32 %v592_v20, %v1190_v16  ;;  %v590_v26 = vmax.f32 %v396_v17, %v529_v21 }
  0xf6   :  { %v1171_v29 = vpop.f32.mrf.mxu0  ;;  %v1193_v30 = vpop.f32.mrf.mxu1  ;;  %v403_v17 = vmax.f32 %v1420_v54, %v1422_v55  ;;  %v406_v18 = vmax.f32 %v1424_v56, %v1426_v57 }
  0xf7   :  { %v1057_v31 = vpack.c.bf16 %v824_v23, %v824_v23  ;;  %v822_v32 = vmax.f32 %v806_v24, 0.0  ;;  %v809_v33 = vadd.f32 %v1451_v9, %v786_v25  ;;  %v784_v34 = vmax.f32 %v590_v26, %v723_v22 }
  0xf8   :  { %v595_v36 = vmax.f32 %v401_v27, %v1171_v29  ;;  %v542_v37 = vpop.f32.mrf.mxu0  ;;  %v736_v38 = vpop.f32.mrf.mxu1  ;;  %v404_v26 = vmax.f32 %v1428_v58, %v1430_v59  ;;  %v409_v58 = vmax.f32 %v1432_v60, %v1434_v61 }
  0xf9   :  { %905 = vst.msk [vmem:[%s1558_s3 + $0x8] sm:$0xf] %vm902_vm2, %v1057_v31  ;;  %v1055_v39 = vpack.c.bf16 %v822_v32, %v822_v32  ;;  %v825_v40 = vmax.f32 %v809_v33, 0.0  ;;  %v807_v41 = vadd.f32 %v1451_v9, %v784_v34  ;;  %v593_v42 = vmax.f32 %v399_v28, %v542_v37 }
  0xfa   :  { %v789_v44 = vmax.f32 %v595_v36, %v1193_v30  ;;  %v1172_v45 = vpop.f32.mrf.mxu0  ;;  %v1194_v46 = vpop.f32.mrf.mxu1  ;;  %v407_v36 = vmax.f32 %v1436_v62, %v1438_v63 }
  0xfb   :  { %903 = vst.msk [vmem:[%s1558_s3] sm:$0xf] %vm902_vm2, %v1055_v39  ;;  %v1058_v47 = vpack.c.bf16 %v825_v40, %v825_v40  ;;  %v823_v48 = vmax.f32 %v807_v41, 0.0  ;;  %v787_v49 = vmax.f32 %v593_v42, %v736_v38  ;;  %v596_v4 = vmax.f32 %v402_v35, %v1172_v45 }
  0xfc   :  { %v812_v6 = vadd.f32 %v1451_v9, %v789_v44  ;;  %v545_v7 = vpop.f32.mrf.mxu0  ;;  %v739_v8 = vpop.f32.mrf.mxu1 }
  0xfd   :  { %906 = vst.msk [vmem:[%s1558_s3 + $0xc] sm:$0xf] %vm902_vm2, %v1058_v47  ;;  %v1056_v50 = vpack.c.bf16 %v823_v48, %v823_v48  ;;  %v810_v51 = vadd.f32 %v1451_v9, %v787_v49  ;;  %v790_v10 = vmax.f32 %v596_v4, %v1194_v46  ;;  %v594_v11 = vmax.f32 %v400_v43, %v545_v7 }
  0xfe   :  { %v828_v12 = vmax.f32 %v812_v6, 0.0  ;;  %v1175_v13 = vpop.f32.mrf.mxu0  ;;  %v1197_v14 = vpop.f32.mrf.mxu1  ;;  %v410_v47 = vmax.f32 %v1440_v0, %v1442_v1  ;;  %v408_v48 = vmax.f32 %v1444_v2, %v1446_v3 }
  0xff   :  { %904 = vst.msk [vmem:[%s1558_s3 + $0x4] sm:$0xf] %vm902_vm2, %v1056_v50  ;;  %v826_v52 = vmax.f32 %v810_v51, 0.0  ;;  %v813_v53 = vadd.f32 %v1451_v9, %v790_v10  ;;  %v788_v15 = vmax.f32 %v594_v11, %v739_v8  ;;  %v599_v16 = vmax.f32 %v405_v5, %v1175_v13 }
 0x100   :  { %v1061_v19 = vpack.c.bf16 %v828_v12, %v828_v12  ;;  %v558_v20 = vpop.f32.mrf.mxu0  ;;  %v752_v21 = vpop.f32.mrf.mxu1 }
 0x101   :  { %v1059_v22 = vpack.c.bf16 %v826_v52, %v826_v52  ;;  %v829_v23 = vmax.f32 %v813_v53, 0.0  ;;  %v811_v24 = vadd.f32 %v1451_v9, %v788_v15  ;;  %v793_v25 = vmax.f32 %v599_v16, %v1197_v14 }
 0x102   :  { %909 = vst.msk [vmem:[%s1558_s3 + $0x18] sm:$0xf] %vm902_vm2, %v1061_v19  ;;  %v597_v54 = vmax.f32 %v403_v17, %v558_v20  ;;  %v1176_v55 = vpop.f32.mrf.mxu0  ;;  %v1198_v27 = vpop.f32.mrf.mxu1 }
 0x103   :  { %907 = vst.msk [vmem:[%s1558_s3 + $0x10] sm:$0xf] %vm902_vm2, %v1059_v22  ;;  %v1062_v56 = vpack.c.bf16 %v829_v23, %v829_v23  ;;  %v827_v57 = vmax.f32 %v811_v24, 0.0  ;;  %v816_v28 = vadd.f32 %v1451_v9, %v793_v25  ;;  %v600_v29 = vmax.f32 %v406_v18, %v1176_v55 }
 0x104   :  { %v791_v59 = vmax.f32 %v597_v54, %v752_v21  ;;  %v561_v30 = vpop.f32.mrf.mxu0  ;;  %v755_v31 = vpop.f32.mrf.mxu1 }
 0x105   :  { %910 = vst.msk [vmem:[%s1558_s3 + $0x1c] sm:$0xf] %vm902_vm2, %v1062_v56  ;;  %v1060_v32 = vpack.c.bf16 %v827_v57, %v827_v57  ;;  %v832_v33 = vmax.f32 %v816_v28, 0.0  ;;  %v794_v34 = vmax.f32 %v600_v29, %v1198_v27  ;;  %v598_v35 = vmax.f32 %v404_v26, %v561_v30 }
 0x106   :  { %v814_v37 = vadd.f32 %v1451_v9, %v791_v59  ;;  %v1179_v38 = vpop.f32.mrf.mxu0  ;;  %v1201_v39 = vpop.f32.mrf.mxu1 }
 0x107   :  { %908 = vst.msk [vmem:[%s1558_s3 + $0x14] sm:$0xf] %vm902_vm2, %v1060_v32  ;;  %v1065_v60 = vpack.c.bf16 %v832_v33, %v832_v33  ;;  %v817_v61 = vadd.f32 %v1451_v9, %v794_v34  ;;  %v792_v40 = vmax.f32 %v598_v35, %v755_v31  ;;  %v603_v41 = vmax.f32 %v409_v58, %v1179_v38 }
 0x108   :  { %v830_v42 = vmax.f32 %v814_v37, 0.0  ;;  %v574_v43 = vpop.f32.mrf.mxu0  ;;  %v768_v44 = vpop.f32.mrf.mxu1 }
 0x109   :  { %913 = vst.msk [vmem:[%s1558_s3 + $0x28] sm:$0xf] %vm902_vm2, %v1065_v60  ;;  %v833_v62 = vmax.f32 %v817_v61, 0.0  ;;  %v815_v63 = vadd.f32 %v1451_v9, %v792_v40  ;;  %v797_v45 = vmax.f32 %v603_v41, %v1201_v39  ;;  %v601_v46 = vmax.f32 %v407_v36, %v574_v43 }
 0x10a   :  { %v1063_v49 = vpack.c.bf16 %v830_v42, %v830_v42  ;;  %v1180_v4 = vpop.f32.mrf.mxu0  ;;  %v1202_v5 = vpop.f32.mrf.mxu1 }
 0x10b   :  { %v1066_v6 = vpack.c.bf16 %v833_v62, %v833_v62  ;;  %v831_v7 = vmax.f32 %v815_v63, 0.0  ;;  %v820_v8 = vadd.f32 %v1451_v9, %v797_v45  ;;  %v795_v50 = vmax.f32 %v601_v46, %v768_v44 }
 0x10c   :  { %911 = vst.msk [vmem:[%s1558_s3 + $0x20] sm:$0xf] %vm902_vm2, %v1063_v49  ;;  %v604_v51 = vmax.f32 %v410_v47, %v1180_v4  ;;  %v577_v10 = vpop.f32.mrf.mxu0  ;;  %v771_v12 = vpop.f32.mrf.mxu1 }
 0x10d   :  { %914 = vst.msk [vmem:[%s1558_s3 + $0x2c] sm:$0xf] %vm902_vm2, %v1066_v6  ;;  %v1064_v0 = vpack.c.bf16 %v831_v7, %v831_v7  ;;  %v836_v1 = vmax.f32 %v820_v8, 0.0  ;;  %v818_v2 = vadd.f32 %v1451_v9, %v795_v50  ;;  %v602_v3 = vmax.f32 %v408_v48, %v577_v10 }
 0x10e   :  { %v798_v11 = vmax.f32 %v604_v51, %v1202_v5 }
 0x10f   :  { %912 = vst.msk [vmem:[%s1558_s3 + $0x24] sm:$0xf] %vm902_vm2, %v1064_v0  ;;  %v1069_v13 = vpack.c.bf16 %v836_v1, %v836_v1  ;;  %v834_v14 = vmax.f32 %v818_v2, 0.0  ;;  %v796_v52 = vmax.f32 %v602_v3, %v771_v12 }
 0x110   :  { %v821_v53 = vadd.f32 %v1451_v9, %v798_v11 }
 0x111   :  { %917 = vst.msk [vmem:[%s1558_s3 + $0x38] sm:$0xf] %vm902_vm2, %v1069_v13  ;;  %v1067_v15 = vpack.c.bf16 %v834_v14, %v834_v14  ;;  %v819_v16 = vadd.f32 %v1451_v9, %v796_v52 }
 0x112   :  { %v837_v17 = vmax.f32 %v821_v53, 0.0 }
 0x113   :  { %915 = vst.msk [vmem:[%s1558_s3 + $0x30] sm:$0xf] %vm902_vm2, %v1067_v15  ;;  %v835_v18 = vmax.f32 %v819_v16, 0.0 }
 0x114   :  { %v1070_v19 = vpack.c.bf16 %v837_v17, %v837_v17 }
 0x115   :  { %v1068_v20 = vpack.c.bf16 %v835_v18, %v835_v18 }
 0x116   :  { %918 = vst.msk [vmem:[%s1558_s3 + $0x3c] sm:$0xf] %vm902_vm2, %v1070_v19 }
 0x117   :  { %916 = vst.msk [vmem:[%s1558_s3 + $0x34] sm:$0xf] %vm902_vm2, %v1068_v20 }

// kernel: target_net_forward.4
= control target key start
LH: loop header
LB: loop body
LE: loop exit
PB: predicated region body
PF: predicated region fallthrough
CT: control target
= control target key end

     0   :  { %vm72_vm0 = vcmask 1043456   ;;  %vm65_vm1 = vcmask 588800   ;;  %vm378_vm2 = vcmask 125952   ;;  %s617_s1 = inlined_call_operand.vmem [shape: bf16[72,16], index: 1, kind: input, shape index: {}]   ;;  %s618_s0 = inlined_call_operand.vmem [shape: bf16[4,32,72], index: 0, kind: input, shape index: {}]   ;;  %s619_s2 = inlined_call_operand.vmem [shape: f32[1,16], index: 2, kind: input, shape index: {}]   ;;  %s620_s3 = inlined_call_operand.vmem [shape: bf16[32,16], index: 3, kind: output, shape index: {}]  }
   0x1   :  { %v517_v0 = vld [vmem:[%s617_s1 + $0x20] ss:$0 sps:$4 sm:$0xff]   ;;  %v518_v1 = vld [vmem:[%s617_s1 + $0x18] sm:$0xff]   ;;  %v519_v3 = vld [vmem:[%s617_s1 + $0x10] sm:$0xff]  }
   0x2   :  { %513 = vmatprep.subr.msk.bf16.mxu0 %vm72_vm0, %v517_v0  ;;  %514 = vmatprep.subr.msk.bf16.mxu1 %vm72_vm0, %v517_v0  ;;  %v74_v2 = vsel %vm72_vm0, %v517_v0, 0  ;;  %v522_v4 = vld [vmem:[%s618_s0] sm:$0xff]   ;;  %v523_v5 = vld [vmem:[%s618_s0 + $0x10] sm:$0xff]   ;;  %v520_v6 = vld [vmem:[%s617_s1 + $0x8] sm:$0xff]  }
   0x3   :  { %458 = vmatpush3.bf16.msra.mxu0 %v74_v2  ;;  %472 = vmatpush3.bf16.msra.mxu1 %v74_v2  ;;  %v521_v7 = vld [vmem:[%s617_s1] sm:$0xff]   ;;  %v524_v8 = vld [vmem:[%s618_s0 + $0x8] sm:$0xff]   ;;  %v525_v9 = vld [vmem:[%s618_s0 + $0x18] sm:$0xff]  }
   0x4   :  { %459 = vmatprep.subr.bf16.mxu0 %v518_v1  ;;  %473 = vmatprep.subr.bf16.mxu1 %v518_v1  ;;  %v526_v10 = vld [vmem:[%s618_s0 + $0x20] sm:$0xff]   ;;  %v527_v11 = vld [vmem:[%s618_s0 + $0x30] sm:$0xff]   ;;  %v528_v12 = vld [vmem:[%s618_s0 + $0x28] sm:$0xff]  }
   0x5   :  { %467 = vmatprep.mubr.msk.bf16.mxu0 %vm65_vm1, %v522_v4  ;;  %481 = vmatprep.mubr.msk.bf16.mxu1 %vm65_vm1, %v523_v5  ;;  %v529_v13 = vld [vmem:[%s618_s0 + $0x38] sm:$0xff]   ;;  %v420_v27 = vld [vmem:[%s619_s2] ss:$0 sm:$0xff] }
   0x7   :  { %460 = vmatpush3.bf16.msra.mxu0 %v518_v1  ;;  %474 = vmatpush3.bf16.msra.mxu1 %v518_v1 }
   0x8   :  { %461 = vmatprep.subr.bf16.mxu0 %v519_v3  ;;  %475 = vmatprep.subr.bf16.mxu1 %v519_v3 }
   0xb   :  { %462 = vmatpush3.bf16.msra.mxu0 %v519_v3  ;;  %476 = vmatpush3.bf16.msra.mxu1 %v519_v3 }
   0xc   :  { %463 = vmatprep.subr.bf16.mxu0 %v520_v6  ;;  %477 = vmatprep.subr.bf16.mxu1 %v520_v6 }
   0xf   :  { %464 = vmatpush3.bf16.msra.mxu0 %v520_v6  ;;  %478 = vmatpush3.bf16.msra.mxu1 %v520_v6 }
  0x10   :  { %465 = vmatprep.subr.bf16.mxu0 %v521_v7  ;;  %479 = vmatprep.subr.bf16.mxu1 %v521_v7 }
  0x13   :  { %466 = vmatpush3.bf16.msra.mxu0 %v521_v7  ;;  %480 = vmatpush3.bf16.msra.mxu1 %v521_v7 }
  0x14   :  { %515 = vmatprep.subr.msk.bf16.mxu0 %vm72_vm0, %v517_v0  ;;  %516 = vmatprep.subr.msk.bf16.mxu1 %vm72_vm0, %v517_v0 }
  0x16   :  { %468 = vmatmul.mubr.msk.bf16.vlgmr.msra.gmra.mxu0 %vm65_vm1, %v524_v8  ;;  %482 = vmatmul.mubr.msk.bf16.vlgmr.msra.gmra.mxu1 %vm65_vm1, %v525_v9 }
  0x17   :  { %486 = vmatpush3.bf16.msra.mxu0 %v74_v2  ;;  %500 = vmatpush3.bf16.msra.mxu1 %v74_v2 }
  0x18   :  { %487 = vmatprep.subr.bf16.mxu0 %v518_v1  ;;  %501 = vmatprep.subr.bf16.mxu1 %v518_v1 }
  0x19   :  { %495 = vmatprep.mubr.msk.bf16.mxu0 %vm65_vm1, %v526_v10  ;;  %509 = vmatprep.mubr.msk.bf16.mxu1 %vm65_vm1, %v527_v11 }
  0x1b   :  { %488 = vmatpush3.bf16.msra.mxu0 %v518_v1  ;;  %502 = vmatpush3.bf16.msra.mxu1 %v518_v1 }
  0x1c   :  { %489 = vmatprep.subr.bf16.mxu0 %v519_v3  ;;  %503 = vmatprep.subr.bf16.mxu1 %v519_v3 }
  0x1f   :  { %490 = vmatpush3.bf16.msra.mxu0 %v519_v3  ;;  %504 = vmatpush3.bf16.msra.mxu1 %v519_v3 }
  0x20   :  { %491 = vmatprep.subr.bf16.mxu0 %v520_v6  ;;  %505 = vmatprep.subr.bf16.mxu1 %v520_v6 }
  0x23   :  { %492 = vmatpush3.bf16.msra.mxu0 %v520_v6  ;;  %506 = vmatpush3.bf16.msra.mxu1 %v520_v6 }
  0x24   :  { %493 = vmatprep.subr.bf16.mxu0 %v521_v7  ;;  %507 = vmatprep.subr.bf16.mxu1 %v521_v7 }
  0x27   :  { %494 = vmatpush3.bf16.msra.mxu0 %v521_v7  ;;  %508 = vmatpush3.bf16.msra.mxu1 %v521_v7 }
  0x2a   :  { %496 = vmatmul.mubr.msk.bf16.vlgmr.msra.gmra.mxu0 %vm65_vm1, %v528_v12  ;;  %510 = vmatmul.mubr.msk.bf16.vlgmr.msra.gmra.mxu1 %vm65_vm1, %v529_v13 }
  0xd6   :  { %v469_v14 = vpop.f32.mrf.mxu0  ;;  %v483_v15 = vpop.f32.mrf.mxu1 }
  0xd7   :  { %v197_v22 = vmax.f32 %v469_v14, %v483_v15 }
  0xd8   :  { %v110_v16 = vpop.f32.mrf.mxu0  ;;  %v180_v17 = vpop.f32.mrf.mxu1 }
  0xd9   :  { %v195_v25 = vmax.f32 %v110_v16, %v180_v17 }
  0xda   :  { %v470_v18 = vpop.f32.mrf.mxu0  ;;  %v484_v19 = vpop.f32.mrf.mxu1 }
  0xdb   :  { %v198_v30 = vmax.f32 %v470_v18, %v484_v19 }
  0xdc   :  { %v113_v20 = vpop.f32.mrf.mxu0  ;;  %v183_v21 = vpop.f32.mrf.mxu1 }
  0xdd   :  { %v196_v35 = vmax.f32 %v113_v20, %v183_v21 }
  0xea   :  { %v497_v23 = vpop.f32.mrf.mxu0  ;;  %v511_v24 = vpop.f32.mrf.mxu1 }
  0xeb   :  { %v271_v26 = vmax.f32 %v197_v22, %v497_v23 }
  0xec   :  { %v254_v28 = vpop.f32.mrf.mxu0  ;;  %v328_v29 = vpop.f32.mrf.mxu1 }
  0xed   :  { %v345_v31 = vmax.f32 %v271_v26, %v511_v24  ;;  %v269_v32 = vmax.f32 %v195_v25, %v254_v28 }
  0xee   :  { %v498_v33 = vpop.f32.mrf.mxu0  ;;  %v512_v34 = vpop.f32.mrf.mxu1 }
  0xef   :  { %v356_v36 = vadd.f32 %v420_v27, %v345_v31  ;;  %v343_v37 = vmax.f32 %v269_v32, %v328_v29  ;;  %v272_v38 = vmax.f32 %v198_v30, %v498_v33 }
  0xf0   :  { %v257_v39 = vpop.f32.mrf.mxu0  ;;  %v331_v44 = vpop.f32.mrf.mxu1 }
  0xf1   :  { %v360_v40 = vmax.f32 %v356_v36, 0.0  ;;  %v354_v41 = vadd.f32 %v420_v27, %v343_v37  ;;  %v346_v42 = vmax.f32 %v272_v38, %v512_v34  ;;  %v270_v43 = vmax.f32 %v196_v35, %v257_v39 }
  0xf3   :  { %v427_v45 = vpack.c.bf16 %v360_v40, %v360_v40  ;;  %v358_v46 = vmax.f32 %v354_v41, 0.0  ;;  %v357_v47 = vadd.f32 %v420_v27, %v346_v42  ;;  %v344_v48 = vmax.f32 %v270_v43, %v331_v44 }
  0xf5   :  { %381 = vst.msk [vmem:[%s620_s3 + $0x8] sm:$0xf] %vm378_vm2, %v427_v45  ;;  %v425_v49 = vpack.c.bf16 %v358_v46, %v358_v46  ;;  %v361_v50 = vmax.f32 %v357_v47, 0.0  ;;  %v355_v51 = vadd.f32 %v420_v27, %v344_v48 }
  0xf7   :  { %379 = vst.msk [vmem:[%s620_s3] sm:$0xf] %vm378_vm2, %v425_v49  ;;  %v428_v52 = vpack.c.bf16 %v361_v50, %v361_v50  ;;  %v359_v53 = vmax.f32 %v355_v51, 0.0 }
  0xf9   :  { %382 = vst.msk [vmem:[%s620_s3 + $0xc] sm:$0xf] %vm378_vm2, %v428_v52  ;;  %v426_v54 = vpack.c.bf16 %v359_v53, %v359_v53 }
  0xfb   :  { %380 = vst.msk [vmem:[%s620_s3 + $0x4] sm:$0xf] %vm378_vm2, %v426_v54 }

// kernel: target_net_forward.5
= control target key start
LH: loop header
LB: loop body
LE: loop exit
PB: predicated region body
PF: predicated region fallthrough
CT: control target
= control target key end

     0   :  { %v74_v8 = vlaneseq  ;;  %v407_v14 = vmov 1966171168   ;;  %s507_s0 = inlined_call_operand.vmem [shape: bf16[2,256], index: 0, kind: input, shape index: {}]   ;;  %s508_s1 = inlined_call_operand.vmem [shape: bf16[256,32], index: 1, kind: input, shape index: {}]   ;;  %s509_s2 = inlined_call_operand.vmem [shape: f32[1,32], index: 2, kind: input, shape index: {}]   ;;  %s510_s3 = inlined_call_operand.vmem [shape: bf16[32,10], index: 3, kind: input, shape index: {}]   ;;  %s511_s4 = inlined_call_operand.vmem [shape: f32[1,10], index: 4, kind: input, shape index: {}]   ;;  %s512_s5 = inlined_call_operand.hbm [shape: f32[2,10], index: 5, kind: output, shape index: {}]  }
   0x1   :  { %v367_v0 = vld [vmem:[%s508_s1 + $0x78] sm:$0xff]   ;;  %v369_v2 = vld [vmem:[%s508_s1 + $0x70] sm:$0xff]   ;;  %v371_v4 = vld [vmem:[%s508_s1 + $0x68] sm:$0xff]   ;;  %v72_v15 = vunpack.c.l.s4 %v407_v14 }
   0x2   :  { %v368_v1 = vld [vmem:[%s508_s1 + $0x38] sm:$0xff]   ;;  %330 = vmatprep.subr.bf16.mxu0 %v367_v0  ;;  %v370_v3 = vld [vmem:[%s508_s1 + $0x30] sm:$0xff]   ;;  %v372_v5 = vld [vmem:[%s508_s1 + $0x28] sm:$0xff]   ;;  %v75_v12 = vshrl.u32 %v74_v8, 7 }
   0x3   :  { %331 = vmatpush3.bf16.msra.mxu0 %v368_v1  ;;  %v373_v6 = vld [vmem:[%s508_s1 + $0x60] sm:$0xff]   ;;  %v375_v9 = vld [vmem:[%s508_s1 + $0x58] sm:$0xff]   ;;  %v377_v11 = vld [vmem:[%s508_s1 + $0x50] sm:$0xff]  }
   0x4   :  { %332 = vmatprep.subr.bf16.mxu0 %v369_v2  ;;  %v374_v7 = vld [vmem:[%s508_s1 + $0x20] sm:$0xff]   ;;  %v376_v10 = vld [vmem:[%s508_s1 + $0x18] sm:$0xff]  }
   0x5   :  { %v309_v13 = vld.sshfl [vmem:[%s507_s0] sm:$0x11 pattern:$0x75316420] }
   0x7   :  { %333 = vmatpush3.bf16.msra.mxu0 %v370_v3 }
   0x8   :  { %334 = vmatprep.subr.bf16.mxu0 %v371_v4 }
   0xb   :  { %335 = vmatpush3.bf16.msra.mxu0 %v372_v5 }
   0xc   :  { %336 = vmatprep.subr.bf16.mxu0 %v373_v6 }
   0xf   :  { %337 = vmatpush3.bf16.msra.mxu0 %v374_v7 }
  0x10   :  { %338 = vmatprep.subr.bf16.mxu0 %v375_v9 }
  0x11   :  { %10 = vsyncpa [#allocation3], 0  ;;  %v378_v16 = vld [vmem:[%s508_s1 + $0x10] sm:$0xff]   ;;  %v70_v17 = vcombine.high %v309_v13, %v309_v13  ;;  %v73_v18 = vunpack.c.0.s8 %v72_v15  ;;  %v379_v19 = vld [vmem:[%s508_s1 + $0x48] sm:$0xff]   ;;  %v408_v27 = vmov 0.0   ;;  %vm409_vm0 = vmmov 0  }
  0x12   :  { %v380_v21 = vld [vmem:[%s508_s1 + $0x8] sm:$0xff]   ;;  %v381_v23 = vld [vmem:[%s508_s1 + $0x40] sm:$0xff]   ;;  %355 = vmatprep.subr.bf16.mxu1 %v408_v27  ;;  %359 = vmatprep.mubr.msk.bf16.mxu1 %vm409_vm0, %v408_v27  ;;  %vm248_vm1 = vcmask 261120   ;;  %vm292_vm2 = vcmask 74752  }
  0x13   :  { %339 = vmatpush3.bf16.msra.mxu0 %v376_v10  ;;  %v76_v20 = vsub.s32 %v73_v18, %v75_v12  ;;  %v382_v24 = vld [vmem:[%s508_s1] sm:$0xff]   ;;  %v383_v26 = vld [vmem:[%s510_s3 + $0x8] sm:$0xff]  }
  0x14   :  { %340 = vmatprep.subr.bf16.mxu0 %v377_v11  ;;  %356 = vmatpush3.bf16.msra.mxu1 %v383_v26  ;;  %v384_v28 = vld [vmem:[%s510_s3] sm:$0xff]   ;;  %s410_s3 = smov [#allocation2]  }
  0x15   :  { %v84_v22 = vrot.slane %v70_v17, %v76_v20  ;;  %v77_v25 = vrot.slane %v309_v13, %v76_v20  ;;  %357 = vmatprep.subr.bf16.mxu1 %v408_v27  ;;  %v308_v30 = vld [vmem:[%s509_s2] ss:$0 sm:$0xff]  ;;  %s300_s8 = sshll.u32 %s410_s3, 4  ;;  %s301_s8 = int_to_ptr.vmem [resolvable:$true] %s300_s8 }
  0x16   :  { %v326_v38 = vld [vmem:[%s511_s4] ss:$0 sm:$0xff]  ;;  %s385_s2 = scalar_lea.vmem %s301_s8, 32  ;;  %p390_p1 = scmp.lt.s32.totalorder %s301_s8, %s301_s8 }
  0x17   :  { %341 = vmatpush3.bf16.msra.mxu0 %v378_v16  ;;  %215 = vmatprep.mubr.bf16.mxu0 %v84_v22  ;;  %p386_p0 = scmp.ne.s32.totalorder %s301_s8, %s385_s2  ;;  %p391_p2 = scmp.lt.s32.totalorder %s385_s2, %s385_s2 }
  0x18   :  { %342 = vmatprep.subr.bf16.mxu0 %v379_v19  ;;  %358 = vmatpush3.bf16.msra.mxu1 %v384_v28 }
  0x19   :  { %p392_p3 = por %p391_p2, %p390_p1 }
  0x1b   :  { %343 = vmatpush3.bf16.msra.mxu0 %v380_v21  ;;  %p393_p4 = pnand %p392_p3, %p386_p0 }
  0x1c   :  { %344 = vmatprep.subr.bf16.mxu0 %v381_v23 }
  0x1f   :  { %345 = vmatpush3.bf16.msra.mxu0 %v382_v24 }
  0x22   :  { %216 = vmatmul.mubr.bf16.vlgmr.msra.gmra.mxu0 %v77_v25 }
  0xe2   :  { %v346_v29 = vpop.f32.mrf.mxu0 }
  0xe4   :  { %v347_v31 = vpop.f32.mrf.mxu0 }
  0xe5   :  { %v348_v32 = vadd.f32 %v347_v31, %v346_v29 }
  0xe6   :  { %v349_v33 = vpop.f32.mrf.mxu0 }
  0xe7   :  { %v218_v34 = vadd.f32 %v348_v32, %v308_v30 }
  0xe8   :  { %v350_v35 = vpop.f32.mrf.mxu0 }
  0xe9   :  { %v223_v36 = vmax.f32 %v218_v34, 0.0 }
  0xeb   :  { %v224_v37 = vpack.c.bf16 %v223_v36, %v223_v36 }
  0xed   :  { %360 = vmatmul.mubr.msk.bf16.vlgmr.msra.gmra.mxu1 %vm248_vm1, %v224_v37 }
 0x1ad   :  { %v286_v39 = vpop.f32.mrf.mxu1 }
 0x1ae   :  { %v287_v40 = vadd.f32 %v326_v38, %v286_v39 }
 0x1af   :  { %v361_v41 = vpop.f32.mrf.mxu1 }
 0x1b0   :  { %293 = vst.msk [vmem:[#allocation2] sm:$0x3] %vm292_vm2, %v287_v40 }
 0x1b1   :  { %v289_v42 = vpop.f32.mrf.mxu1 }
 0x1b2   :  { %396 = shalt.err (!%p393_p4)
}
 0x1b3   :  { %303 = dma.vmem_to_hbm [thread:$0]  %s301_s8, 32, %s512_s5, [#allocation3]   ;;  %v362_v43 = vpop.f32.mrf.mxu1 }
 0x1b4   :  { %405 = dma.done.wait [#allocation3], 32  }
 0x1b5   :  { %406 = vsyncadd [#allocation3], 4294967264 }
 0x1b6   :  { %307 = vsyncpa [#allocation3], 1 }

</bundles_post_ra>
